<compile_context>
chip_gen: v7x
topology: tpu7x:2x2x1
jax: 0.10.0
libtpu: 0.0.40
codegen_flags: <defaults>
</compile_context>

<pallas_src>
import jax
import jax.numpy as jnp
from jax.experimental import pallas as pl
from jax.experimental.pallas import tpu as pltpu


def _nconv_kernel(x_ref, at_ref, o_ref):
    # x_ref : (V, tm)  lane-dense slab of x (columns are fused (n, c, l))
    # at_ref: (W, V)   A^T, resident in VMEM across the whole grid
    # o_ref : (W, tm)  matching slab of the output
    o_ref[...] = jnp.dot(
        at_ref[...], x_ref[...], preferred_element_type=jnp.float32
    ).astype(o_ref.dtype)
    # Note: if bit-level parity with a strict f32 reference is required, pass
    # precision=jax.lax.Precision.HIGHEST to jnp.dot (not needed for the
    # module's semantics; default matches jnp.einsum's default).


def to_graph_major(x):
    """(N, C, V, L) -> (V, N*C*L).  One XLA copy; amortize across a conv stack."""
    N, C, V, L = x.shape
    return jnp.transpose(x, (2, 0, 1, 3)).reshape(V, N * C * L)


def from_graph_major(y, ncl):
    """(W, N*C*L) -> (N, C, W, L).  Inverse layout change for the output."""
    N, C, L = ncl
    W = y.shape[0]
    return jnp.transpose(y.reshape(W, N, C, L), (1, 2, 0, 3))


def nconv_graph_major(x_gm, A, *, m_tile=4096):
    """Graph conv on graph-major activations: (V, M), (V, W) -> (W, M)."""
    assert x_gm.ndim == 2, "x_gm must be (V, M) graph-major"
    V, M = x_gm.shape
    Va, W = A.shape
    assert Va == V, "A first dim must match node dim of x"

    # Cast the tiny, VMEM-resident operand to the streamed dtype; never upcast
    # the big streamed tensor (accumulation is f32 regardless).
    dtype = x_gm.dtype
    A_t = A.T.astype(dtype)  # (W, V)

    LANE = 128
    itemsize = jnp.dtype(dtype).itemsize

    # Cap the tile so double-buffered x/out blocks stay within ~20 MiB
    # (comfortable under v7x's 64 MiB-per-TC VMEM; v5e/v6e have more).
    stream_budget = 20 * 2**20
    tm_cap = max(LANE, (stream_budget // (2 * (V + W) * itemsize)) // LANE * LANE)

    # Aim for at least 2 grid blocks (so v7x's second TensorCore gets work):
    # half ~= ceil(M/2) rounded up to a lane multiple.
    half = ((M + 2 * LANE - 1) // (2 * LANE)) * LANE
    tm = max(LANE, min(m_tile, tm_cap, half))
    if tm >= M:
        # Single block covering the full extent (valid for any M, incl. M<128).
        tm = M

    grid = (pl.cdiv(M, tm),)

    # Explicit scoped-VMEM limit: v5e's default is only 16 MiB; keep well under
    # v7x's 64 MiB-per-TC physical VMEM.
    need = 2 * (V + W) * tm * itemsize + 2 * W * V * itemsize
    vmem_limit = int(min(48 * 2**20, max(32 * 2**20, int(1.5 * need))))

    return pl.pallas_call(
        _nconv_kernel,
        out_shape=jax.ShapeDtypeStruct((W, M), dtype),
        grid_spec=pltpu.PrefetchScalarGridSpec(
            num_scalar_prefetch=0,
            grid=grid,
            in_specs=[
                # Streaming (V, tm) slab of x; marches along M with the grid.
                pl.BlockSpec((V, tm), lambda m: (0, m)),
                # A^T: constant index_map -> stays resident in VMEM.
                pl.BlockSpec((W, V), lambda m: (0, 0)),
            ],
            out_specs=pl.BlockSpec((W, tm), lambda m: (0, m)),
        ),
        compiler_params=pltpu.CompilerParams(
            # Single pure-streaming axis: parallel (lets v7x split it over TCs).
            dimension_semantics=("parallel",),
            vmem_limit_bytes=vmem_limit,
        ),
    )(x_gm, A_t)


def nconv(x, A, *, m_tile=4096):
    """Equivalent of torch.einsum('ncvl,vw->ncwl', x, A).contiguous().

    x: (N, C, V, L), A: (V, W) -> out: (N, C, W, L).
    For stacks of graph convolutions, prefer to_graph_major + repeated
    nconv_graph_major + from_graph_major to amortize the layout passes.
    """
    N, C, V, L = x.shape
    y = nconv_graph_major(to_graph_major(x), A.astype(x.dtype), m_tile=m_tile)
    return from_graph_major(y, (N, C, L))


if __name__ == "__main__":
    key = jax.random.PRNGKey(0)
    kx, ka = jax.random.split(key)

    # Small shapes consistent with the module: batch=2, channels=4,
    # nodes V=16 (square adjacency, W=V), sequence length L=8.
    N, C, V, L = 2, 4, 16, 8
    W = V

    x = jax.random.normal(kx, (N, C, V, L), dtype=jnp.float32)
    A = jax.random.normal(ka, (V, W), dtype=jnp.float32)

    # Drop-in single-call form.
    out = jax.block_until_ready(nconv(x, A))
    ref = jnp.einsum("ncvl,vw->ncwl", x, A)
    assert out.shape == (N, C, W, L)
    assert jnp.allclose(out, ref, atol=1e-5, rtol=1e-5), "mismatch vs reference"

    # Amortized-layout path (review option (a)): chain two graph convs while
    # staying in graph-major layout, converting once in and once out.
    x_gm = to_graph_major(x)
    y_gm = nconv_graph_major(nconv_graph_major(x_gm, A), A)
    out2 = jax.block_until_ready(from_graph_major(y_gm, (N, C, L)))
    ref2 = jnp.einsum("ncvl,vw->ncwl", ref, A)
    assert jnp.allclose(out2, ref2, atol=1e-4, rtol=1e-4), "chained mismatch"

    print("KERNEL_OK")
</pallas_src>

<mosaic_0001>
module attributes {stable_mosaic.version = 11 : i64} {
  func.func @_nconv_kernel(%arg0: i32, %arg1: memref<16x64xf32, #tpu.memory_space<vmem>>, %arg2: memref<16x16xf32, #tpu.memory_space<vmem>>, %arg3: memref<16x64xf32, #tpu.memory_space<vmem>>) attributes {dimension_semantics = [#tpu.dimension_semantics<parallel>], iteration_bounds = array<i64: 1>, scalar_prefetch = 0 : i64, scratch_operands = 0 : i64, tpu.core_type = #tpu.core_type<tc>, window_params = [{transform_indices = @transform_0, window_bounds = array<i64: 16, 64>}, {pipeline_mode = #tpu.pipeline_mode<synchronous>, transform_indices = @transform_1, window_bounds = array<i64: 16, 16>}, {transform_indices = @transform_2, window_bounds = array<i64: 16, 64>}]} {
    %c0 = arith.constant 0 : index
    %c0_0 = arith.constant 0 : index
    %0 = vector.load %arg2[%c0, %c0_0] : memref<16x16xf32, #tpu.memory_space<vmem>>, vector<16x16xf32>
    %c0_1 = arith.constant 0 : index
    %c0_2 = arith.constant 0 : index
    %1 = vector.load %arg1[%c0_1, %c0_2] : memref<16x64xf32, #tpu.memory_space<vmem>>, vector<16x64xf32>
    %cst = arith.constant dense<0.000000e+00> : vector<16x64xf32>
    %2 = tpu.matmul %0, %1, %cst {dimension_numbers = #tpu.dot_dimension_numbers<[1], [0], [0], [1], [0, 0, 1, 1], [], []>} : vector<16x16xf32>, vector<16x64xf32>, vector<16x64xf32> -> vector<16x64xf32>
    %c0_3 = arith.constant 0 : index
    %c0_4 = arith.constant 0 : index
    %3 = vector.load %arg3[%c0_3, %c0_4] : memref<16x64xf32, #tpu.memory_space<vmem>>, vector<16x64xf32>
    tpu.vector_store %arg3[%c0_3, %c0_4], %2 {strides = array<i32>} : memref<16x64xf32, #tpu.memory_space<vmem>>, vector<16x64xf32>,
    return
  }
  func.func @transform_0(%arg0: i32) -> (i32, i32) {
    %c0_i32 = arith.constant 0 : i32
    %c0_i32_0 = arith.constant 0 : i32
    return %c0_i32, %arg0 : i32, i32
  }
  func.func @transform_1(%arg0: i32) -> (i32, i32) {
    %c0_i32 = arith.constant 0 : i32
    %c0_i32_0 = arith.constant 0 : i32
    %c0_i32_1 = arith.constant 0 : i32
    return %c0_i32, %c0_i32_0 : i32, i32
  }
  func.func @transform_2(%arg0: i32) -> (i32, i32) {
    %c0_i32 = arith.constant 0 : i32
    %c0_i32_0 = arith.constant 0 : i32
    return %c0_i32, %arg0 : i32, i32
  }
}

</mosaic_0001>

<bundles_post_ra>
// kernel: tpu_custom_call.1
= control target key start
LH: loop header
LB: loop body
LE: loop exit
PB: predicated region body
PF: predicated region fallthrough
CT: control target
= control target key end

     0   :  { %7 = vsyncpa [#allocation3], 0  ;;  %s306_s0 = inlined_call_operand.hbm [shape: f32[16,64], index: 0, kind: input, shape index: {}]   ;;  %s307_s1 = inlined_call_operand.hbm [shape: f32[16,16], index: 1, kind: input, shape index: {}]   ;;  %s308_s2 = inlined_call_operand.hbm [shape: f32[16,64], index: 2, kind: output, shape index: {}]  }
   0x1   :  { %8 = vsyncpa [#allocation6], 0 }
   0x2   :  { %9 = vsyncpa [#allocation4], 0  ;;  %s241_s9 = smov [#allocation2]   ;;  %s169_s13 = scalar_lea.hbm %s306_s0, 256 }
   0x3   :  { %s15_s10 = sshll.u32 %s241_s9, 4  ;;  %p170_p0 = scmp.ne.s32.totalorder %s306_s0, %s169_s13  ;;  %s16_s10 = int_to_ptr.vmem [resolvable:$true] %s15_s10 }
   0x4   :  { %p173_p1 = scmp.lt.u32.totalorder %s169_s13, %s306_s0 }
   0x6   :  { %p175_p2 = pnand %p173_p1, %p170_p0 }
   0x8   :  { %178 = shalt.err (!%p175_p2)
}
   0x9   :  { %s179_s18 = scalar_lea.vmem %s16_s10, 256  ;;  %p184_p4 = scmp.lt.s32.totalorder %s16_s10, %s16_s10 }
   0xa   :  { %p180_p3 = scmp.ne.s32.totalorder %s16_s10, %s179_s18  ;;  %p185_p5 = scmp.lt.s32.totalorder %s179_s18, %s179_s18 }
   0xc   :  { %p186_p6 = por %p185_p5, %p184_p4 }
   0xe   :  { %p187_p7 = pnand %p186_p6, %p180_p3 }
  0x10   :  { %190 = shalt.err (!%p187_p7)
}
  0x11   :  { %s242_s19 = smov 128   ;;  %s243_s20 = smov 8  }
  0x12   :  { %21 = dma.hbm_to_vmem [thread:$0]  %s306_s0, 256, %s16_s10, [#allocation3], %s242_s19, %s242_s19, %s243_s20  }
  0x13   :  { %s244_s23 = smov [#allocation5]   ;;  %s191_s27 = scalar_lea.hbm %s307_s1, 256 }
  0x14   :  { %s27_s24 = sshll.u32 %s244_s23, 4  ;;  %p192_p8 = scmp.ne.s32.totalorder %s307_s1, %s191_s27  ;;  %s28_s24 = int_to_ptr.vmem [resolvable:$true] %s27_s24 }
  0x15   :  { %p195_p9 = scmp.lt.u32.totalorder %s191_s27, %s307_s1 }
  0x17   :  { %p197_p10 = pnand %p195_p9, %p192_p8 }
  0x19   :  { %200 = shalt.err (!%p197_p10)
}
  0x1a   :  { %s201_s4 = scalar_lea.vmem %s28_s24, 256  ;;  %p206_p12 = scmp.lt.s32.totalorder %s28_s24, %s28_s24 }
  0x1b   :  { %p202_p11 = scmp.ne.s32.totalorder %s28_s24, %s201_s4  ;;  %p207_p13 = scmp.lt.s32.totalorder %s201_s4, %s201_s4 }
  0x1d   :  { %p208_p0 = por %p207_p13, %p206_p12 }
  0x1f   :  { %p209_p1 = pnand %p208_p0, %p202_p11 }
  0x21   :  { %212 = shalt.err (!%p209_p1)
}
  0x22   :  { %33 = dma.hbm_to_vmem [thread:$0]  %s307_s1, 256, %s28_s24, [#allocation6], %s242_s19, %s242_s19, %s243_s20  }
  0x23   :  { %235 = dma.done.wait [#allocation3], 256  }
  0x24   :  { %236 = vsyncadd [#allocation3], 4294967040 }
  0x25   :  { %237 = dma.done.wait [#allocation6], 256  }
  0x26   :  { %238 = vsyncadd [#allocation6], 4294967040  ;;  %vm44_vm0 = vcmask 130048   ;;  %v42_v0 = vld [vmem:[#allocation2] sm:$0xff]  ;;  %v43_v1 = vld [vmem:[#allocation2 + $0x8] sm:$0xff]  ;;  %s245_s6 = smov [#allocation7]  }
  0x27   :  { %v40_v2 = vld [vmem:[#allocation5] sm:$0xff]  ;;  %v160_v3 = vpack.c.bf16 %v43_v1, %v42_v0  ;;  %v41_v4 = vld [vmem:[#allocation5 + $0x8] sm:$0xff]  ;;  %s134_s7 = sshll.u32 %s245_s6, 4  ;;  %vm126_vm1 = vcmask 523264   ;;  %s135_s7 = int_to_ptr.vmem [resolvable:$true] %s134_s7 }
  0x28   :  { %157 = vmatprep.mubr.msk.f32.mxu0 %vm44_vm0, %v40_v2  ;;  %s213_s1 = scalar_lea.vmem %s135_s7, 256  ;;  %p218_p3 = scmp.lt.s32.totalorder %s135_s7, %s135_s7 }
  0x29   :  { %161 = vmatprep.subr.bf16.mxu0 %v160_v3  ;;  %p214_p2 = scmp.ne.s32.totalorder %s135_s7, %s213_s1  ;;  %p219_p4 = scmp.lt.s32.totalorder %s213_s1, %s213_s1 }
  0x2a   :  { %163 = vmatpush3.bf16.msra.mxu0 %v160_v3 }
  0x2b   :  { %p220_p5 = por %p219_p4, %p218_p3 }
  0x2d   :  { %158 = vmatmul.mubr.msk.f32.vlgmr.msra.gmra.mrb[0].mxu0 %vm44_vm0, %v41_v4  ;;  %p221_p6 = pnand %p220_p5, %p214_p2 }
 0x100   :  { %v159_v5 = vpop.f32.mrb[0].mxu0 }
 0x101   :  { %128 = vst.msk [vmem:[#allocation7 + $0x8] sm:$0xff] %vm126_vm1, %v159_v5  ;;  %v117_v6 = vpop.f32.mrb[1].mxu0 }
 0x102   :  { %127 = vst.msk [vmem:[#allocation7] sm:$0xff] %vm126_vm1, %v117_v6 }
 0x103   :  { %224 = shalt.err (!%p221_p6)
}
 0x104   :  { %s225_s10 = scalar_lea.hbm %s308_s2, 256 }
 0x105   :  { %p226_p7 = scmp.ne.s32.totalorder %s308_s2, %s225_s10  ;;  %p229_p8 = scmp.lt.u32.totalorder %s225_s10, %s308_s2 }
 0x107   :  { %p231_p9 = pnand %p229_p8, %p226_p7 }
 0x109   :  { %234 = shalt.err (!%p231_p9)
}
 0x10a   :  { %140 = dma.vmem_to_hbm [thread:$0]  %s135_s7, 256, %s308_s2, [#allocation4], %s242_s19, %s242_s19, %s243_s20  }
 0x10b   :  { %239 = dma.done.wait [#allocation4], 256  }
 0x10c   :  { %240 = vsyncadd [#allocation4], 4294967040 }
 0x10d   :  { %144 = vsyncpa [#allocation3], 1 }
 0x10e   :  { %145 = vsyncpa [#allocation6], 1 }
 0x10f   :  { %146 = vsyncpa [#allocation4], 1 }

</bundles_post_ra>
